<compile_context>
chip_gen: v7x
topology: tpu7x:2x2x1
jax: 0.10.0
libtpu: 0.0.40
codegen_flags: <defaults>
</compile_context>

<pallas_src>
import numpy as np
import jax
import jax.numpy as jnp
from jax.experimental import pallas as pl
from jax.experimental.pallas import tpu as pltpu


# ---------------------------------------------------------------------------
# Generation-aware budgets.
# ---------------------------------------------------------------------------

def _vmem_capacity_bytes():
    try:
        info = pltpu.get_tpu_info()
        cap = int(getattr(info, "vmem_capacity_bytes", 0))
        if cap > 0:
            return cap
    except Exception:
        pass
    return 64 << 20                      # conservative floor (v7x per-core VMEM)


_VMEM_CAP = _vmem_capacity_bytes()
_BIG_VMEM = _VMEM_CAP >= (96 << 20)      # v5e / v6e (128 MiB) vs v7x (64 MiB)
# Single-buffered (bf16) Kronecker blur-operator budget.
_KRON_BYTES_MAX = (8 << 20) if _BIG_VMEM else (4 << 20)
# Per-grid-step image-block budget, counted in f32 *compute* bytes.
_MAX_BLOCK_BYTES = (6 << 20) if _BIG_VMEM else (3 << 20)


def _round_up(x, m):
    return ((x + m - 1) // m) * m


def _clamp_vmem(estimate):
    hi = min(_VMEM_CAP - (8 << 20), 112 << 20)
    return int(max(32 << 20, min(int(estimate), hi)))


# ---------------------------------------------------------------------------
# Host-side construction of the Gaussian blur matrices (torchvision semantics).
# ---------------------------------------------------------------------------

def _gaussian_kernel1d(ksize, sigma):
    half = (ksize - 1) * 0.5
    x = np.linspace(-half, half, ksize)
    pdf = np.exp(-0.5 * (x / sigma) ** 2)
    return pdf / pdf.sum()


def _blur_matrix(n, ksize, dtype=np.float32):
    """B[out, src] so that (B @ v) is the 1-D Gaussian blur of v with 'reflect' padding."""
    sigma = 0.3 * ((ksize - 1) * 0.5 - 1) + 0.8          # torchvision default sigma
    k1d = _gaussian_kernel1d(ksize, sigma)
    r = ksize // 2
    B = np.zeros((n, n), dtype=np.float64)
    for out in range(n):
        for t in range(ksize):
            src = out + t - r
            if src < 0:                                   # torch 'reflect' (no edge repeat)
                src = -src
            elif src >= n:
                src = 2 * (n - 1) - src
            B[out, src] += k1d[t]
    return B.astype(dtype)


# ---------------------------------------------------------------------------
# Kernels.
# ---------------------------------------------------------------------------

def _to_out_dtype(x, dtype):
    if jnp.issubdtype(dtype, jnp.integer):
        info = jnp.iinfo(dtype)
        x = jnp.clip(jnp.round(x), info.min, info.max)    # torchvision-style int round
    return x.astype(dtype)


def _kron_blur_kernel(k_ref, x_ref, o_ref):
    # x_ref: (bp, HW) slab of flattened planes; k_ref: (HW, HWp) = kron(Bh,Bw).T (lane-padded).
    x = x_ref[...].astype(k_ref.dtype)
    y = jnp.dot(x, k_ref[...], preferred_element_type=jnp.float32)
    o_ref[...] = _to_out_dtype(y, o_ref.dtype)


def _separable_blur_kernel(bh_ref, bwt_ref, x_ref, o_ref):
    # x_ref: (bp, H, W); bh_ref: (H, H) = Bh; bwt_ref: (W, Wp) = Bw.T (lane-padded).
    # Per plane: out = Bh @ (X @ Bw.T)  -- no transposes / relayouts needed.
    cdt = bh_ref.dtype
    bp = x_ref.shape[0]
    bh = bh_ref[...]
    bwt = bwt_ref[...]

    @pl.loop(0, bp)
    def _(p):
        xp = x_ref[p].astype(cdt)                                           # (H, W)
        t = jnp.dot(xp, bwt, preferred_element_type=jnp.float32)            # blur W -> (H, Wp)
        y = jnp.dot(bh, t.astype(cdt), preferred_element_type=jnp.float32)  # blur H -> (H, Wp)
        o_ref[p] = _to_out_dtype(y, o_ref.dtype)


# ---------------------------------------------------------------------------
# pallas_call wrappers.
# ---------------------------------------------------------------------------

def _plane_block(P, f32_plane_bytes, sublane_align=False):
    """Largest divisor bp of P whose per-step block fits the f32 budget.

    Prefers bp <= P//2 (>= 2 grid steps so both TensorCores are used on v7x) and, for
    the 2-D kron slab, bp % 8 == 0 or bp == P (the (8,128) BlockSpec rule)."""
    cap = max(1, _MAX_BLOCK_BYTES // max(int(f32_plane_bytes), 1))
    divisors = [d for d in range(1, P + 1) if P % d == 0]

    def valid(d, want_two_steps):
        if d > cap:
            return False
        if sublane_align and d % 8 != 0 and d != P:
            return False
        if want_two_steps and P >= 2 and d > P // 2:
            return False
        return True

    for want_two_steps in (True, False):
        cands = [d for d in divisors if valid(d, want_two_steps)]
        if cands:
            return max(cands)
    return None


def _blur_kron_impl(flat2d, kron_t, single_buffer):
    P, HW = flat2d.shape
    HWp = kron_t.shape[1]
    bp = _plane_block(P, HW * 4, sublane_align=True)
    op_kw = {"pipeline_mode": pl.Buffered(1)} if single_buffer else {}
    vmem_est = (HW * HWp * kron_t.dtype.itemsize * (1 if single_buffer else 2)
                + 2 * bp * HW * flat2d.dtype.itemsize          # input blocks (double-buffered)
                + 2 * bp * HWp * flat2d.dtype.itemsize         # output blocks
                + bp * (HW + HWp) * 4                          # in-kernel transients
                + (4 << 20))
    return pl.pallas_call(
        _kron_blur_kernel,
        out_shape=jax.ShapeDtypeStruct((P, HWp), flat2d.dtype),
        grid_spec=pltpu.PrefetchScalarGridSpec(
            num_scalar_prefetch=0,
            grid=(P // bp,),
            in_specs=[
                pl.BlockSpec((HW, HWp), lambda i: (0, 0), **op_kw),   # resident operator
                pl.BlockSpec((bp, HW), lambda i: (i, 0)),             # bp planes per step
            ],
            out_specs=pl.BlockSpec((bp, HWp), lambda i: (i, 0)),
        ),
        compiler_params=pltpu.CompilerParams(
            dimension_semantics=("parallel",),
            vmem_limit_bytes=_clamp_vmem(vmem_est)),
    )(kron_t, flat2d)


_blur_kron = jax.jit(_blur_kron_impl, static_argnums=(2,))


def _blur_separable_impl(flat3d, bh, bw_t, single_buffer):
    P, H, W = flat3d.shape
    Wp = bw_t.shape[1]
    bp = _plane_block(P, H * Wp * 4)
    op_kw = {"pipeline_mode": pl.Buffered(1)} if single_buffer else {}
    nbuf = 1 if single_buffer else 2
    vmem_est = ((H * H + W * Wp) * bh.dtype.itemsize * nbuf     # resident operators
                + 2 * bp * H * W * flat3d.dtype.itemsize        # input blocks
                + 2 * bp * H * Wp * flat3d.dtype.itemsize       # output blocks
                + 12 * H * Wp                                   # per-plane transients
                + (4 << 20))
    # TODO(synk): for very large planes (H, W >~ 2k) the dense (H,H)/(W,W) operators stop
    # fitting VMEM; a banded (k-halo) / pltpu.roll formulation with an H-axis grid tile is
    # the structural fix.
    return pl.pallas_call(
        _separable_blur_kernel,
        out_shape=jax.ShapeDtypeStruct((P, H, Wp), flat3d.dtype),
        grid_spec=pltpu.PrefetchScalarGridSpec(
            num_scalar_prefetch=0,
            grid=(P // bp,),
            in_specs=[
                pl.BlockSpec((H, H), lambda i: (0, 0), **op_kw),      # Bh (resident)
                pl.BlockSpec((W, Wp), lambda i: (0, 0), **op_kw),     # Bw.T, lane-padded
                pl.BlockSpec((bp, H, W), lambda i: (i, 0, 0)),
            ],
            out_specs=pl.BlockSpec((bp, H, Wp), lambda i: (i, 0, 0)),
        ),
        compiler_params=pltpu.CompilerParams(
            dimension_semantics=("parallel",),
            vmem_limit_bytes=_clamp_vmem(vmem_est)),
    )(bh, bw_t, flat3d)


_blur_separable = jax.jit(_blur_separable_impl, static_argnums=(3,))


# ---------------------------------------------------------------------------
# Module wrapper mirroring util/distorationattack.py::Blurring.
# ---------------------------------------------------------------------------

class BlurringPallas:
    def __init__(self, N_blur=7, compute_dtype=jnp.bfloat16, force_separable=False):
        self.blur = int(N_blur)
        self.compute_dtype = np.dtype(compute_dtype)   # bf16 MXU matmuls; f32 opt-in
        self.force_separable = bool(force_separable)
        self._cache = {}                               # blur operators, reused across calls
        self._single_buffer_ok = True                  # falls back if pl.Buffered(1) rejected

    # -- cached blur operators -------------------------------------------------
    def _bh(self, H, k):
        key = ("bh", H, k, self.compute_dtype.name)
        if key not in self._cache:
            self._cache[key] = jnp.asarray(_blur_matrix(H, k), dtype=self.compute_dtype)
        return self._cache[key]

    def _bw_t(self, W, k):
        key = ("bw_t", W, k, self.compute_dtype.name)
        if key not in self._cache:
            bwt = _blur_matrix(W, k).T                          # (W_src, W_out)
            Wp = _round_up(W, 128)
            if Wp != W:                                         # lane-dense output columns
                bwt = np.concatenate([bwt, np.zeros((W, Wp - W), np.float32)], axis=1)
            self._cache[key] = jnp.asarray(bwt, dtype=self.compute_dtype)
        return self._cache[key]

    def _kron_t(self, H, W, k):
        key = ("kron_t", H, W, k, self.compute_dtype.name)
        if key not in self._cache:
            kt = np.kron(_blur_matrix(H, k), _blur_matrix(W, k)).T.astype(np.float32)
            HW = H * W
            HWp = _round_up(HW, 128)
            if HWp != HW:
                kt = np.concatenate([kt, np.zeros((HW, HWp - HW), np.float32)], axis=1)
            self._cache[key] = jnp.asarray(kt, dtype=self.compute_dtype)
        return self._cache[key]

    # -- single-buffer fallback --------------------------------------------------
    def _run(self, fn, *args):
        if self._single_buffer_ok:
            try:
                return fn(*args, True)
            except Exception:
                self._single_buffer_ok = False   # pl.Buffered(1) unsupported -> default buffering
        return fn(*args, False)

    def __call__(self, image, N_blur=None):
        if N_blur is not None:
            self.blur = int(N_blur)
        k = self.blur
        if k <= 0 or k % 2 == 0:
            raise ValueError("kernel_size must be a positive odd integer")
        N, C, H, W = image.shape
        if k // 2 >= min(H, W):
            raise ValueError("kernel radius must be smaller than the image size")
        P, HW = N * C, H * W
        HWp = _round_up(HW, 128)
        use_kron = (not self.force_separable
                    and HW * HWp * self.compute_dtype.itemsize <= _KRON_BYTES_MAX
                    and _plane_block(P, HW * 4, sublane_align=True) is not None)
        if use_kron:
            out = self._run(_blur_kron, image.reshape(P, HW), self._kron_t(H, W, k))
            if HWp != HW:
                out = out[:, :HW]
        else:
            out = self._run(_blur_separable, image.reshape(P, H, W),
                            self._bh(H, k), self._bw_t(W, k))
            if out.shape[-1] != W:
                out = out[..., :W]
        return out.reshape(N, C, H, W)


# ---------------------------------------------------------------------------
# Reference + demo.
# ---------------------------------------------------------------------------

def _reference_blur(image_np, ksize):
    sigma = 0.3 * ((ksize - 1) * 0.5 - 1) + 0.8
    k1d = _gaussian_kernel1d(ksize, sigma)
    r = ksize // 2
    _, _, H, W = image_np.shape
    padded = np.pad(image_np.astype(np.float64),
                    ((0, 0), (0, 0), (r, r), (r, r)), mode="reflect")
    out = np.zeros(image_np.shape, dtype=np.float64)
    for dy in range(ksize):
        for dx in range(ksize):
            out += k1d[dy] * k1d[dx] * padded[:, :, dy:dy + H, dx:dx + W]
    return out.astype(image_np.dtype)


if __name__ == "__main__":
    # 1) Small image -> single Kronecker-operator matmul path (lane-dense, HW = 256).
    key = jax.random.PRNGKey(0)
    image = jax.random.normal(key, (2, 4, 16, 16), dtype=jnp.float32)
    module = BlurringPallas(N_blur=7)
    out = jax.block_until_ready(module(image))
    assert out.shape == image.shape and out.dtype == image.dtype
    ref = _reference_blur(np.asarray(image), 7)
    np.testing.assert_allclose(np.asarray(out), ref, rtol=5e-2, atol=5e-2)

    # 2) Exercise the separable (large-image) path at a small, non-128-aligned shape.
    image2 = jax.random.normal(jax.random.PRNGKey(0), (2, 3, 48, 56), dtype=jnp.float32)
    module2 = BlurringPallas(N_blur=5, force_separable=True)
    out2 = jax.block_until_ready(module2(image2))
    assert out2.shape == image2.shape and out2.dtype == image2.dtype
    ref2 = _reference_blur(np.asarray(image2), 5)
    np.testing.assert_allclose(np.asarray(out2), ref2, rtol=5e-2, atol=5e-2)

    print("KERNEL_OK")
</pallas_src>

<mosaic_0001>
module attributes {stable_mosaic.version = 11 : i64} {
  func.func @_kron_blur_kernel(%arg0: i32, %arg1: memref<256x256xbf16, #tpu.memory_space<vmem>>, %arg2: memref<8x256xf32, #tpu.memory_space<vmem>>, %arg3: memref<8x256xf32, #tpu.memory_space<vmem>>) attributes {dimension_semantics = [#tpu.dimension_semantics<parallel>], iteration_bounds = array<i64: 1>, scalar_prefetch = 0 : i64, scratch_operands = 0 : i64, tpu.core_type = #tpu.core_type<tc>, window_params = [{pipeline_mode = #tpu.pipeline_mode<synchronous>, transform_indices = @transform_0, window_bounds = array<i64: 256, 256>}, {transform_indices = @transform_1, window_bounds = array<i64: 8, 256>}, {transform_indices = @transform_2, window_bounds = array<i64: 8, 256>}]} {
    %c0 = arith.constant 0 : index
    %c0_0 = arith.constant 0 : index
    %0 = vector.load %arg2[%c0, %c0_0] : memref<8x256xf32, #tpu.memory_space<vmem>>, vector<8x256xf32>
    %1 = arith.truncf %0 : vector<8x256xf32> to vector<8x256xbf16>
    %c0_1 = arith.constant 0 : index
    %c0_2 = arith.constant 0 : index
    %2 = vector.load %arg1[%c0_1, %c0_2] : memref<256x256xbf16, #tpu.memory_space<vmem>>, vector<256x256xbf16>
    %cst = arith.constant dense<0.000000e+00> : vector<8x256xf32>
    %3 = tpu.matmul %1, %2, %cst {dimension_numbers = #tpu.dot_dimension_numbers<[1], [0], [0], [1], [0, 0, 1, 1], [], []>} : vector<8x256xbf16>, vector<256x256xbf16>, vector<8x256xf32> -> vector<8x256xf32>
    %c0_3 = arith.constant 0 : index
    %c0_4 = arith.constant 0 : index
    %4 = vector.load %arg3[%c0_3, %c0_4] : memref<8x256xf32, #tpu.memory_space<vmem>>, vector<8x256xf32>
    tpu.vector_store %arg3[%c0_3, %c0_4], %3 {strides = array<i32>} : memref<8x256xf32, #tpu.memory_space<vmem>>, vector<8x256xf32>,
    return
  }
  func.func @transform_0(%arg0: i32) -> (i32, i32) {
    %c0_i32 = arith.constant 0 : i32
    %c0_i32_0 = arith.constant 0 : i32
    %c0_i32_1 = arith.constant 0 : i32
    return %c0_i32, %c0_i32_0 : i32, i32
  }
  func.func @transform_1(%arg0: i32) -> (i32, i32) {
    %c0_i32 = arith.constant 0 : i32
    %c0_i32_0 = arith.constant 0 : i32
    return %arg0, %c0_i32 : i32, i32
  }
  func.func @transform_2(%arg0: i32) -> (i32, i32) {
    %c0_i32 = arith.constant 0 : i32
    %c0_i32_0 = arith.constant 0 : i32
    return %arg0, %c0_i32 : i32, i32
  }
}

module attributes {stable_mosaic.version = 11 : i64} {
  func.func @_kron_blur_kernel(%arg0: i32, %arg1: memref<256x256xbf16, #tpu.memory_space<vmem>>, %arg2: memref<8x256xf32, #tpu.memory_space<vmem>>, %arg3: memref<8x256xf32, #tpu.memory_space<vmem>>) attributes {dimension_semantics = [#tpu.dimension_semantics<parallel>], iteration_bounds = array<i64: 1>, scalar_prefetch = 0 : i64, scratch_operands = 0 : i64, tpu.core_type = #tpu.core_type<tc>, window_params = [{pipeline_mode = #tpu.pipeline_mode<synchronous>, transform_indices = @transform_0, window_bounds = array<i64: 256, 256>}, {transform_indices = @transform_1, window_bounds = array<i64: 8, 256>}, {transform_indices = @transform_2, window_bounds = array<i64: 8, 256>}]} {
    %c0 = arith.constant 0 : index
    %c0_0 = arith.constant 0 : index
    %0 = vector.load %arg2[%c0, %c0_0] : memref<8x256xf32, #tpu.memory_space<vmem>>, vector<8x256xf32>
    %1 = arith.truncf %0 : vector<8x256xf32> to vector<8x256xbf16>
    %c0_1 = arith.constant 0 : index
    %c0_2 = arith.constant 0 : index
    %2 = vector.load %arg1[%c0_1, %c0_2] : memref<256x256xbf16, #tpu.memory_space<vmem>>, vector<256x256xbf16>
    %cst = arith.constant dense<0.000000e+00> : vector<8x256xf32>
    %3 = tpu.matmul %1, %2, %cst {dimension_numbers = #tpu.dot_dimension_numbers<[1], [0], [0], [1], [0, 0, 1, 1], [], []>} : vector<8x256xbf16>, vector<256x256xbf16>, vector<8x256xf32> -> vector<8x256xf32>
    %c0_3 = arith.constant 0 : index
    %c0_4 = arith.constant 0 : index
    %4 = vector.load %arg3[%c0_3, %c0_4] : memref<8x256xf32, #tpu.memory_space<vmem>>, vector<8x256xf32>
    tpu.vector_store %arg3[%c0_3, %c0_4], %3 {strides = array<i32>} : memref<8x256xf32, #tpu.memory_space<vmem>>, vector<8x256xf32>,
    return
  }
  func.func @transform_0(%arg0: i32) -> (i32, i32) {
    %c0_i32 = arith.constant 0 : i32
    %c0_i32_0 = arith.constant 0 : i32
    %c0_i32_1 = arith.constant 0 : i32
    return %c0_i32, %c0_i32_0 : i32, i32
  }
  func.func @transform_1(%arg0: i32) -> (i32, i32) {
    %c0_i32 = arith.constant 0 : i32
    %c0_i32_0 = arith.constant 0 : i32
    return %arg0, %c0_i32 : i32, i32
  }
  func.func @transform_2(%arg0: i32) -> (i32, i32) {
    %c0_i32 = arith.constant 0 : i32
    %c0_i32_0 = arith.constant 0 : i32
    return %arg0, %c0_i32 : i32, i32
  }
}

</mosaic_0001>

<bundles_post_ra>
// kernel: _blur_kron_impl.1
= control target key start
LH: loop header
LB: loop body
LE: loop exit
PB: predicated region body
PF: predicated region fallthrough
CT: control target
= control target key end

     0   :  { %7 = vsyncpa [#allocation3], 0  ;;  %s506_s0 = inlined_call_operand.hbm [shape: bf16[256,256], index: 0, kind: input, shape index: {}]   ;;  %s507_s1 = inlined_call_operand.hbm [shape: f32[8,256], index: 1, kind: input, shape index: {}]   ;;  %s508_s2 = inlined_call_operand.hbm [shape: f32[8,256], index: 2, kind: output, shape index: {}]  }
   0x1   :  { %8 = vsyncpa [#allocation6], 0 }
   0x2   :  { %9 = vsyncpa [#allocation4], 0  ;;  %s450_s9 = smov [#allocation2]   ;;  %s378_s13 = scalar_lea.hbm %s506_s0, 4096 }
   0x3   :  { %s15_s10 = sshll.u32 %s450_s9, 4  ;;  %p379_p0 = scmp.ne.s32.totalorder %s506_s0, %s378_s13  ;;  %s16_s10 = int_to_ptr.vmem [resolvable:$true] %s15_s10 }
   0x4   :  { %p382_p1 = scmp.lt.u32.totalorder %s378_s13, %s506_s0 }
   0x6   :  { %p384_p2 = pnand %p382_p1, %p379_p0 }
   0x8   :  { %387 = shalt.err (!%p384_p2)
}
   0x9   :  { %s388_s18 = scalar_lea.vmem %s16_s10, 4096  ;;  %p393_p4 = scmp.lt.s32.totalorder %s16_s10, %s16_s10 }
   0xa   :  { %p389_p3 = scmp.ne.s32.totalorder %s16_s10, %s388_s18  ;;  %p394_p5 = scmp.lt.s32.totalorder %s388_s18, %s388_s18 }
   0xc   :  { %p395_p6 = por %p394_p5, %p393_p4 }
   0xe   :  { %p396_p7 = pnand %p395_p6, %p389_p3 }
  0x10   :  { %399 = shalt.err (!%p396_p7)
}
  0x11   :  { %s451_s19 = smov 128   ;;  %s452_s20 = smov 8  }
  0x12   :  { %21 = dma.hbm_to_vmem [thread:$0]  %s506_s0, 4096, %s16_s10, [#allocation3], %s451_s19, %s451_s19, %s452_s20  }
  0x13   :  { %s453_s23 = smov [#allocation5]   ;;  %s400_s27 = scalar_lea.hbm %s507_s1, 256 }
  0x14   :  { %s28_s24 = sshll.u32 %s453_s23, 4  ;;  %p401_p8 = scmp.ne.s32.totalorder %s507_s1, %s400_s27  ;;  %s29_s24 = int_to_ptr.vmem [resolvable:$true] %s28_s24 }
  0x15   :  { %p404_p9 = scmp.lt.u32.totalorder %s400_s27, %s507_s1 }
  0x17   :  { %p406_p10 = pnand %p404_p9, %p401_p8 }
  0x19   :  { %409 = shalt.err (!%p406_p10)
}
  0x1a   :  { %s410_s4 = scalar_lea.vmem %s29_s24, 256  ;;  %p415_p12 = scmp.lt.s32.totalorder %s29_s24, %s29_s24 }
  0x1b   :  { %p411_p11 = scmp.ne.s32.totalorder %s29_s24, %s410_s4  ;;  %p416_p13 = scmp.lt.s32.totalorder %s410_s4, %s410_s4 }
  0x1d   :  { %p417_p0 = por %p416_p13, %p415_p12 }
  0x1f   :  { %p418_p1 = pnand %p417_p0, %p411_p11 }
  0x21   :  { %421 = shalt.err (!%p418_p1)
}
  0x22   :  { %31 = dma.hbm_to_vmem [thread:$0]  %s507_s1, 256, %s29_s24, [#allocation6]  }
  0x23   :  { %444 = dma.done.wait [#allocation3], 4096  }
  0x24   :  { %445 = vsyncadd [#allocation3], 4294963200 }
  0x25   :  { %446 = dma.done.wait [#allocation6], 256  }
  0x26   :  { %447 = vsyncadd [#allocation6], 4294967040  ;;  %v330_v0 = vld [vmem:[#allocation2 + $0x4] ss:$8 sps:$4 sm:$0xff]   ;;  %v332_v1 = vld [vmem:[#allocation2] ss:$8 sps:$4 sm:$0xff]  }
  0x27   :  { %234 = vmatprep.subr.bf16.mxu0 %v330_v0  ;;  %v333_v2 = vld [vmem:[#allocation2 + $0x14] ss:$8 sps:$4 sm:$0xff]   ;;  %v335_v3 = vld [vmem:[#allocation2 + $0x10] ss:$8 sps:$4 sm:$0xff]   ;;  %v336_v4 = vld [vmem:[#allocation2 + $0x24] ss:$8 sps:$4 sm:$0xff]  }
  0x28   :  { %235 = vmatpush1.bf16.msra.mxu0 %v332_v1  ;;  %v338_v5 = vld [vmem:[#allocation2 + $0x20] ss:$8 sps:$4 sm:$0xff]   ;;  %v339_v6 = vld [vmem:[#allocation2 + $0x34] ss:$8 sps:$4 sm:$0xff]   ;;  %v341_v7 = vld [vmem:[#allocation2 + $0x30] ss:$8 sps:$4 sm:$0xff]  }
  0x29   :  { %236 = vmatprep.subr.bf16.mxu0 %v333_v2  ;;  %v342_v8 = vld [vmem:[#allocation2 + $0x44] ss:$8 sps:$4 sm:$0xff]   ;;  %v344_v9 = vld [vmem:[#allocation2 + $0x40] ss:$8 sps:$4 sm:$0xff]   ;;  %v345_v10 = vld [vmem:[#allocation2 + $0x54] ss:$8 sps:$4 sm:$0xff]  }
  0x2a   :  { %v347_v11 = vld [vmem:[#allocation2 + $0x50] ss:$8 sps:$4 sm:$0xff]   ;;  %v348_v12 = vld [vmem:[#allocation2 + $0x64] ss:$8 sps:$4 sm:$0xff]   ;;  %v350_v15 = vld [vmem:[#allocation2 + $0x60] ss:$8 sps:$4 sm:$0xff]  }
  0x2b   :  { %v39_v13 = vld [vmem:[#allocation5 + $0x8] sm:$0xff]  ;;  %v351_v16 = vld [vmem:[#allocation2 + $0x74] ss:$8 sps:$4 sm:$0xff]   ;;  %v353_v17 = vld [vmem:[#allocation2 + $0x70] ss:$8 sps:$4 sm:$0xff]   ;;  %s454_s1 = smov [#allocation7]  }
  0x2c   :  { %237 = vmatpush1.bf16.msra.mxu0 %v335_v3  ;;  %v41_v14 = vpack.c.bf16 %v39_v13, %v39_v13  ;;  %v354_v18 = vld [vmem:[#allocation2 + $0x84] ss:$8 sps:$4 sm:$0xff]   ;;  %v356_v19 = vld [vmem:[#allocation2 + $0x80] ss:$8 sps:$4 sm:$0xff]   ;;  %v357_v20 = vld [vmem:[#allocation2 + $0x94] ss:$8 sps:$4 sm:$0xff]  }
  0x2d   :  { %238 = vmatprep.subr.bf16.mxu0 %v336_v4  ;;  %v359_v21 = vld [vmem:[#allocation2 + $0x90] ss:$8 sps:$4 sm:$0xff]   ;;  %v360_v22 = vld [vmem:[#allocation2 + $0xa4] ss:$8 sps:$4 sm:$0xff]   ;;  %v362_v23 = vld [vmem:[#allocation2 + $0xa0] ss:$8 sps:$4 sm:$0xff]  }
  0x2e   :  { %266 = vmatprep.mubr.bf16.mxu0 %v41_v14  ;;  %v363_v24 = vld [vmem:[#allocation2 + $0xb4] ss:$8 sps:$4 sm:$0xff]   ;;  %v365_v25 = vld [vmem:[#allocation2 + $0xb0] ss:$8 sps:$4 sm:$0xff]   ;;  %v366_v26 = vld [vmem:[#allocation2 + $0xc4] ss:$8 sps:$4 sm:$0xff]  }
  0x2f   :  { %v368_v27 = vld [vmem:[#allocation2 + $0xc0] ss:$8 sps:$4 sm:$0xff]   ;;  %v369_v28 = vld [vmem:[#allocation2 + $0xd4] ss:$8 sps:$4 sm:$0xff]   ;;  %v371_v29 = vld [vmem:[#allocation2 + $0xd0] ss:$8 sps:$4 sm:$0xff]  }
  0x30   :  { %239 = vmatpush1.bf16.msra.mxu0 %v338_v5  ;;  %v372_v30 = vld [vmem:[#allocation2 + $0xe4] ss:$8 sps:$4 sm:$0xff]   ;;  %v374_v31 = vld [vmem:[#allocation2 + $0xe0] ss:$8 sps:$4 sm:$0xff]   ;;  %v375_v32 = vld [vmem:[#allocation2 + $0xf4] ss:$8 sps:$4 sm:$0xff]  }
  0x31   :  { %240 = vmatprep.subr.bf16.mxu0 %v339_v6  ;;  %v377_v33 = vld [vmem:[#allocation2 + $0xf0] ss:$8 sps:$4 sm:$0xff]   ;;  %v38_v34 = vld [vmem:[#allocation5] sm:$0xff]  ;;  %s283_s6 = sshll.u32 %s454_s1, 4  ;;  %s284_s6 = int_to_ptr.vmem [resolvable:$true] %s283_s6 }
  0x32   :  { %v40_v35 = vpack.c.bf16 %v38_v34, %v38_v34  ;;  %s422_s7 = scalar_lea.vmem %s284_s6, 256  ;;  %p427_p3 = scmp.lt.s32.totalorder %s284_s6, %s284_s6 }
  0x33   :  { %p423_p2 = scmp.ne.s32.totalorder %s284_s6, %s422_s7  ;;  %p428_p4 = scmp.lt.s32.totalorder %s422_s7, %s422_s7 }
  0x34   :  { %241 = vmatpush1.bf16.msra.mxu0 %v341_v7 }
  0x35   :  { %242 = vmatprep.subr.bf16.mxu0 %v342_v8  ;;  %p429_p5 = por %p428_p4, %p427_p3 }
  0x37   :  { %p430_p6 = pnand %p429_p5, %p423_p2 }
  0x38   :  { %243 = vmatpush1.bf16.msra.mxu0 %v344_v9 }
  0x39   :  { %244 = vmatprep.subr.bf16.mxu0 %v345_v10 }
  0x3c   :  { %245 = vmatpush1.bf16.msra.mxu0 %v347_v11 }
  0x3d   :  { %246 = vmatprep.subr.bf16.mxu0 %v348_v12 }
  0x40   :  { %247 = vmatpush1.bf16.msra.mxu0 %v350_v15 }
  0x41   :  { %248 = vmatprep.subr.bf16.mxu0 %v351_v16 }
  0x44   :  { %249 = vmatpush1.bf16.msra.mxu0 %v353_v17 }
  0x45   :  { %250 = vmatprep.subr.bf16.mxu0 %v354_v18 }
  0x48   :  { %251 = vmatpush1.bf16.msra.mxu0 %v356_v19 }
  0x49   :  { %252 = vmatprep.subr.bf16.mxu0 %v357_v20 }
  0x4c   :  { %253 = vmatpush1.bf16.msra.mxu0 %v359_v21 }
  0x4d   :  { %254 = vmatprep.subr.bf16.mxu0 %v360_v22 }
  0x50   :  { %255 = vmatpush1.bf16.msra.mxu0 %v362_v23 }
  0x51   :  { %256 = vmatprep.subr.bf16.mxu0 %v363_v24 }
  0x54   :  { %257 = vmatpush1.bf16.msra.mxu0 %v365_v25 }
  0x55   :  { %258 = vmatprep.subr.bf16.mxu0 %v366_v26 }
  0x58   :  { %259 = vmatpush1.bf16.msra.mxu0 %v368_v27 }
  0x59   :  { %260 = vmatprep.subr.bf16.mxu0 %v369_v28 }
  0x5c   :  { %261 = vmatpush1.bf16.msra.mxu0 %v371_v29 }
  0x5d   :  { %262 = vmatprep.subr.bf16.mxu0 %v372_v30 }
  0x60   :  { %263 = vmatpush1.bf16.msra.mxu0 %v374_v31 }
  0x61   :  { %264 = vmatprep.subr.bf16.mxu0 %v375_v32 }
  0x64   :  { %265 = vmatpush1.bf16.msra.mxu0 %v377_v33 }
  0x67   :  { %267 = vmatmul.mubr.bf16.vlgmr.msra.gmra.mrb[0].mxu0 %v40_v35 }
 0x13a   :  { %v268_v36 = vpop.f32.mrb[0].mxu0 }
 0x13b   :  { %275 = vst [vmem:[#allocation7] sm:$0xff] %v268_v36  ;;  %v270_v37 = vpop.f32.mrb[1].mxu0 }
 0x13c   :  { %276 = vst [vmem:[#allocation7 + $0x8] sm:$0xff] %v270_v37  ;;  %v272_v38 = vpop.f32.mrb[2].mxu0 }
 0x13d   :  { %v273_v39 = vpop.f32.mrb[3].mxu0 }
 0x13e   :  { %433 = shalt.err (!%p430_p6)
}
 0x13f   :  { %s434_s10 = scalar_lea.hbm %s508_s2, 256 }
 0x140   :  { %p435_p7 = scmp.ne.s32.totalorder %s508_s2, %s434_s10  ;;  %p438_p8 = scmp.lt.u32.totalorder %s434_s10, %s508_s2 }
 0x142   :  { %p440_p9 = pnand %p438_p8, %p435_p7 }
 0x144   :  { %443 = shalt.err (!%p440_p9)
}
 0x145   :  { %286 = dma.vmem_to_hbm [thread:$0]  %s284_s6, 256, %s508_s2, [#allocation4]  }
 0x146   :  { %448 = dma.done.wait [#allocation4], 256  }
 0x147   :  { %449 = vsyncadd [#allocation4], 4294967040 }
 0x148   :  { %290 = vsyncpa [#allocation3], 1 }
 0x149   :  { %291 = vsyncpa [#allocation6], 1 }
 0x14a   :  { %292 = vsyncpa [#allocation4], 1 }

// kernel: _blur_kron_impl.1
= control target key start
LH: loop header
LB: loop body
LE: loop exit
PB: predicated region body
PF: predicated region fallthrough
CT: control target
= control target key end

     0   :  { %7 = vsyncpa [#allocation3], 0  ;;  %s506_s0 = inlined_call_operand.hbm [shape: bf16[256,256], index: 0, kind: input, shape index: {}]   ;;  %s507_s1 = inlined_call_operand.hbm [shape: f32[8,256], index: 1, kind: input, shape index: {}]   ;;  %s508_s2 = inlined_call_operand.hbm [shape: f32[8,256], index: 2, kind: output, shape index: {}]  }
   0x1   :  { %8 = vsyncpa [#allocation6], 0 }
   0x2   :  { %9 = vsyncpa [#allocation4], 0  ;;  %s450_s9 = smov [#allocation2]   ;;  %s378_s13 = scalar_lea.hbm %s506_s0, 4096 }
   0x3   :  { %s15_s10 = sshll.u32 %s450_s9, 4  ;;  %p379_p0 = scmp.ne.s32.totalorder %s506_s0, %s378_s13  ;;  %s16_s10 = int_to_ptr.vmem [resolvable:$true] %s15_s10 }
   0x4   :  { %p382_p1 = scmp.lt.u32.totalorder %s378_s13, %s506_s0 }
   0x6   :  { %p384_p2 = pnand %p382_p1, %p379_p0 }
   0x8   :  { %387 = shalt.err (!%p384_p2)
}
   0x9   :  { %s388_s18 = scalar_lea.vmem %s16_s10, 4096  ;;  %p393_p4 = scmp.lt.s32.totalorder %s16_s10, %s16_s10 }
   0xa   :  { %p389_p3 = scmp.ne.s32.totalorder %s16_s10, %s388_s18  ;;  %p394_p5 = scmp.lt.s32.totalorder %s388_s18, %s388_s18 }
   0xc   :  { %p395_p6 = por %p394_p5, %p393_p4 }
   0xe   :  { %p396_p7 = pnand %p395_p6, %p389_p3 }
  0x10   :  { %399 = shalt.err (!%p396_p7)
}
  0x11   :  { %s451_s19 = smov 128   ;;  %s452_s20 = smov 8  }
  0x12   :  { %21 = dma.hbm_to_vmem [thread:$0]  %s506_s0, 4096, %s16_s10, [#allocation3], %s451_s19, %s451_s19, %s452_s20  }
  0x13   :  { %s453_s23 = smov [#allocation5]   ;;  %s400_s27 = scalar_lea.hbm %s507_s1, 256 }
  0x14   :  { %s28_s24 = sshll.u32 %s453_s23, 4  ;;  %p401_p8 = scmp.ne.s32.totalorder %s507_s1, %s400_s27  ;;  %s29_s24 = int_to_ptr.vmem [resolvable:$true] %s28_s24 }
  0x15   :  { %p404_p9 = scmp.lt.u32.totalorder %s400_s27, %s507_s1 }
  0x17   :  { %p406_p10 = pnand %p404_p9, %p401_p8 }
  0x19   :  { %409 = shalt.err (!%p406_p10)
}
  0x1a   :  { %s410_s4 = scalar_lea.vmem %s29_s24, 256  ;;  %p415_p12 = scmp.lt.s32.totalorder %s29_s24, %s29_s24 }
  0x1b   :  { %p411_p11 = scmp.ne.s32.totalorder %s29_s24, %s410_s4  ;;  %p416_p13 = scmp.lt.s32.totalorder %s410_s4, %s410_s4 }
  0x1d   :  { %p417_p0 = por %p416_p13, %p415_p12 }
  0x1f   :  { %p418_p1 = pnand %p417_p0, %p411_p11 }
  0x21   :  { %421 = shalt.err (!%p418_p1)
}
  0x22   :  { %31 = dma.hbm_to_vmem [thread:$0]  %s507_s1, 256, %s29_s24, [#allocation6]  }
  0x23   :  { %444 = dma.done.wait [#allocation3], 4096  }
  0x24   :  { %445 = vsyncadd [#allocation3], 4294963200 }
  0x25   :  { %446 = dma.done.wait [#allocation6], 256  }
  0x26   :  { %447 = vsyncadd [#allocation6], 4294967040  ;;  %v330_v0 = vld [vmem:[#allocation2 + $0x4] ss:$8 sps:$4 sm:$0xff]   ;;  %v332_v1 = vld [vmem:[#allocation2] ss:$8 sps:$4 sm:$0xff]  }
  0x27   :  { %234 = vmatprep.subr.bf16.mxu0 %v330_v0  ;;  %v333_v2 = vld [vmem:[#allocation2 + $0x14] ss:$8 sps:$4 sm:$0xff]   ;;  %v335_v3 = vld [vmem:[#allocation2 + $0x10] ss:$8 sps:$4 sm:$0xff]   ;;  %v336_v4 = vld [vmem:[#allocation2 + $0x24] ss:$8 sps:$4 sm:$0xff]  }
  0x28   :  { %235 = vmatpush1.bf16.msra.mxu0 %v332_v1  ;;  %v338_v5 = vld [vmem:[#allocation2 + $0x20] ss:$8 sps:$4 sm:$0xff]   ;;  %v339_v6 = vld [vmem:[#allocation2 + $0x34] ss:$8 sps:$4 sm:$0xff]   ;;  %v341_v7 = vld [vmem:[#allocation2 + $0x30] ss:$8 sps:$4 sm:$0xff]  }
  0x29   :  { %236 = vmatprep.subr.bf16.mxu0 %v333_v2  ;;  %v342_v8 = vld [vmem:[#allocation2 + $0x44] ss:$8 sps:$4 sm:$0xff]   ;;  %v344_v9 = vld [vmem:[#allocation2 + $0x40] ss:$8 sps:$4 sm:$0xff]   ;;  %v345_v10 = vld [vmem:[#allocation2 + $0x54] ss:$8 sps:$4 sm:$0xff]  }
  0x2a   :  { %v347_v11 = vld [vmem:[#allocation2 + $0x50] ss:$8 sps:$4 sm:$0xff]   ;;  %v348_v12 = vld [vmem:[#allocation2 + $0x64] ss:$8 sps:$4 sm:$0xff]   ;;  %v350_v15 = vld [vmem:[#allocation2 + $0x60] ss:$8 sps:$4 sm:$0xff]  }
  0x2b   :  { %v39_v13 = vld [vmem:[#allocation5 + $0x8] sm:$0xff]  ;;  %v351_v16 = vld [vmem:[#allocation2 + $0x74] ss:$8 sps:$4 sm:$0xff]   ;;  %v353_v17 = vld [vmem:[#allocation2 + $0x70] ss:$8 sps:$4 sm:$0xff]   ;;  %s454_s1 = smov [#allocation7]  }
  0x2c   :  { %237 = vmatpush1.bf16.msra.mxu0 %v335_v3  ;;  %v41_v14 = vpack.c.bf16 %v39_v13, %v39_v13  ;;  %v354_v18 = vld [vmem:[#allocation2 + $0x84] ss:$8 sps:$4 sm:$0xff]   ;;  %v356_v19 = vld [vmem:[#allocation2 + $0x80] ss:$8 sps:$4 sm:$0xff]   ;;  %v357_v20 = vld [vmem:[#allocation2 + $0x94] ss:$8 sps:$4 sm:$0xff]  }
  0x2d   :  { %238 = vmatprep.subr.bf16.mxu0 %v336_v4  ;;  %v359_v21 = vld [vmem:[#allocation2 + $0x90] ss:$8 sps:$4 sm:$0xff]   ;;  %v360_v22 = vld [vmem:[#allocation2 + $0xa4] ss:$8 sps:$4 sm:$0xff]   ;;  %v362_v23 = vld [vmem:[#allocation2 + $0xa0] ss:$8 sps:$4 sm:$0xff]  }
  0x2e   :  { %266 = vmatprep.mubr.bf16.mxu0 %v41_v14  ;;  %v363_v24 = vld [vmem:[#allocation2 + $0xb4] ss:$8 sps:$4 sm:$0xff]   ;;  %v365_v25 = vld [vmem:[#allocation2 + $0xb0] ss:$8 sps:$4 sm:$0xff]   ;;  %v366_v26 = vld [vmem:[#allocation2 + $0xc4] ss:$8 sps:$4 sm:$0xff]  }
  0x2f   :  { %v368_v27 = vld [vmem:[#allocation2 + $0xc0] ss:$8 sps:$4 sm:$0xff]   ;;  %v369_v28 = vld [vmem:[#allocation2 + $0xd4] ss:$8 sps:$4 sm:$0xff]   ;;  %v371_v29 = vld [vmem:[#allocation2 + $0xd0] ss:$8 sps:$4 sm:$0xff]  }
  0x30   :  { %239 = vmatpush1.bf16.msra.mxu0 %v338_v5  ;;  %v372_v30 = vld [vmem:[#allocation2 + $0xe4] ss:$8 sps:$4 sm:$0xff]   ;;  %v374_v31 = vld [vmem:[#allocation2 + $0xe0] ss:$8 sps:$4 sm:$0xff]   ;;  %v375_v32 = vld [vmem:[#allocation2 + $0xf4] ss:$8 sps:$4 sm:$0xff]  }
  0x31   :  { %240 = vmatprep.subr.bf16.mxu0 %v339_v6  ;;  %v377_v33 = vld [vmem:[#allocation2 + $0xf0] ss:$8 sps:$4 sm:$0xff]   ;;  %v38_v34 = vld [vmem:[#allocation5] sm:$0xff]  ;;  %s283_s6 = sshll.u32 %s454_s1, 4  ;;  %s284_s6 = int_to_ptr.vmem [resolvable:$true] %s283_s6 }
  0x32   :  { %v40_v35 = vpack.c.bf16 %v38_v34, %v38_v34  ;;  %s422_s7 = scalar_lea.vmem %s284_s6, 256  ;;  %p427_p3 = scmp.lt.s32.totalorder %s284_s6, %s284_s6 }
  0x33   :  { %p423_p2 = scmp.ne.s32.totalorder %s284_s6, %s422_s7  ;;  %p428_p4 = scmp.lt.s32.totalorder %s422_s7, %s422_s7 }
  0x34   :  { %241 = vmatpush1.bf16.msra.mxu0 %v341_v7 }
  0x35   :  { %242 = vmatprep.subr.bf16.mxu0 %v342_v8  ;;  %p429_p5 = por %p428_p4, %p427_p3 }
  0x37   :  { %p430_p6 = pnand %p429_p5, %p423_p2 }
  0x38   :  { %243 = vmatpush1.bf16.msra.mxu0 %v344_v9 }
  0x39   :  { %244 = vmatprep.subr.bf16.mxu0 %v345_v10 }
  0x3c   :  { %245 = vmatpush1.bf16.msra.mxu0 %v347_v11 }
  0x3d   :  { %246 = vmatprep.subr.bf16.mxu0 %v348_v12 }
  0x40   :  { %247 = vmatpush1.bf16.msra.mxu0 %v350_v15 }
  0x41   :  { %248 = vmatprep.subr.bf16.mxu0 %v351_v16 }
  0x44   :  { %249 = vmatpush1.bf16.msra.mxu0 %v353_v17 }
  0x45   :  { %250 = vmatprep.subr.bf16.mxu0 %v354_v18 }
  0x48   :  { %251 = vmatpush1.bf16.msra.mxu0 %v356_v19 }
  0x49   :  { %252 = vmatprep.subr.bf16.mxu0 %v357_v20 }
  0x4c   :  { %253 = vmatpush1.bf16.msra.mxu0 %v359_v21 }
  0x4d   :  { %254 = vmatprep.subr.bf16.mxu0 %v360_v22 }
  0x50   :  { %255 = vmatpush1.bf16.msra.mxu0 %v362_v23 }
  0x51   :  { %256 = vmatprep.subr.bf16.mxu0 %v363_v24 }
  0x54   :  { %257 = vmatpush1.bf16.msra.mxu0 %v365_v25 }
  0x55   :  { %258 = vmatprep.subr.bf16.mxu0 %v366_v26 }
  0x58   :  { %259 = vmatpush1.bf16.msra.mxu0 %v368_v27 }
  0x59   :  { %260 = vmatprep.subr.bf16.mxu0 %v369_v28 }
  0x5c   :  { %261 = vmatpush1.bf16.msra.mxu0 %v371_v29 }
  0x5d   :  { %262 = vmatprep.subr.bf16.mxu0 %v372_v30 }
  0x60   :  { %263 = vmatpush1.bf16.msra.mxu0 %v374_v31 }
  0x61   :  { %264 = vmatprep.subr.bf16.mxu0 %v375_v32 }
  0x64   :  { %265 = vmatpush1.bf16.msra.mxu0 %v377_v33 }
  0x67   :  { %267 = vmatmul.mubr.bf16.vlgmr.msra.gmra.mrb[0].mxu0 %v40_v35 }
 0x13a   :  { %v268_v36 = vpop.f32.mrb[0].mxu0 }
 0x13b   :  { %275 = vst [vmem:[#allocation7] sm:$0xff] %v268_v36  ;;  %v270_v37 = vpop.f32.mrb[1].mxu0 }
 0x13c   :  { %276 = vst [vmem:[#allocation7 + $0x8] sm:$0xff] %v270_v37  ;;  %v272_v38 = vpop.f32.mrb[2].mxu0 }
 0x13d   :  { %v273_v39 = vpop.f32.mrb[3].mxu0 }
 0x13e   :  { %433 = shalt.err (!%p430_p6)
}
 0x13f   :  { %s434_s10 = scalar_lea.hbm %s508_s2, 256 }
 0x140   :  { %p435_p7 = scmp.ne.s32.totalorder %s508_s2, %s434_s10  ;;  %p438_p8 = scmp.lt.u32.totalorder %s434_s10, %s508_s2 }
 0x142   :  { %p440_p9 = pnand %p438_p8, %p435_p7 }
 0x144   :  { %443 = shalt.err (!%p440_p9)
}
 0x145   :  { %286 = dma.vmem_to_hbm [thread:$0]  %s284_s6, 256, %s508_s2, [#allocation4]  }
 0x146   :  { %448 = dma.done.wait [#allocation4], 256  }
 0x147   :  { %449 = vsyncadd [#allocation4], 4294967040 }
 0x148   :  { %290 = vsyncpa [#allocation3], 1 }
 0x149   :  { %291 = vsyncpa [#allocation6], 1 }
 0x14a   :  { %292 = vsyncpa [#allocation4], 1 }

</bundles_post_ra>
